<compile_context>
chip_gen: v5e
topology: v5e:2x2
jax: 0.10.0
libtpu: 0.0.40
codegen_flags: <defaults>
</compile_context>

<pallas_src>
import functools

import jax
import jax.numpy as jnp
from jax import lax
from jax.experimental import pallas as pl
from jax.experimental.pallas import tpu as pltpu

LANES = 128
SUBLANES = 8
_CHUNK_ROWS = 1024                         # compute granularity inside a block (512 KiB f32)
_SINGLE_BLOCK_MAX_BYTES = 4 * 1024 * 1024  # <= 4 MiB / input: gridless single block


def _l1_single_block_kernel(total_elems, pred_ref, label_ref, out_ref):
    """Whole problem in one VMEM block; chunked reduce; scalar SMEM output."""
    rows = pred_ref.shape[0]
    n_chunks = rows // _CHUNK_ROWS             # static
    rem_rows = rows - n_chunks * _CHUNK_ROWS   # static

    s = jnp.float32(0.0)
    if n_chunks > 0:
        def body(j, acc):
            r0 = pl.multiple_of(j * _CHUNK_ROWS, _CHUNK_ROWS)
            a = pred_ref[pl.ds(r0, _CHUNK_ROWS), :].astype(jnp.float32)
            b = label_ref[pl.ds(r0, _CHUNK_ROWS), :].astype(jnp.float32)
            d = jnp.abs(a - b)
            return acc + jnp.sum(d.reshape(-1, SUBLANES, LANES), axis=0)

        part = lax.fori_loop(0, n_chunks, body,
                             jnp.zeros((SUBLANES, LANES), jnp.float32))
        s = s + jnp.sum(part)
    if rem_rows > 0:
        r0 = n_chunks * _CHUNK_ROWS
        a = pred_ref[pl.ds(r0, rem_rows), :].astype(jnp.float32)
        b = label_ref[pl.ds(r0, rem_rows), :].astype(jnp.float32)
        s = s + jnp.sum(jnp.abs(a - b))
    out_ref[0] = s / jnp.float32(total_elems)


def _l1_tiled_kernel(total_elems, tile_rows, tiles_per_core,
                     pred_ref, label_ref, out_ref):
    """Streaming reduction: accumulate an (8,128) f32 partial per core."""
    c = pl.program_id(0)   # partial / TensorCore index ("parallel")
    t = pl.program_id(1)   # tile within this core's stream ("arbitrary")

    @pl.when(t == 0)
    def _():
        out_ref[...] = jnp.zeros_like(out_ref)

    tile_elems = tile_rows * LANES
    n_chunks = tile_rows // _CHUNK_ROWS                 # static
    base = (c * tiles_per_core + t) * tile_elems        # logical flat offset of this tile
    # TODO(synk): int32 flat indexing limits inputs to < 2**31 elements.

    def partial_sum(masked):
        if masked:
            row = lax.broadcasted_iota(jnp.int32, (_CHUNK_ROWS, LANES), 0)
            lane = lax.broadcasted_iota(jnp.int32, (_CHUNK_ROWS, LANES), 1)
            local = row * LANES + lane                  # flat offset within a chunk

        def body(j, acc):
            r0 = pl.multiple_of(j * _CHUNK_ROWS, _CHUNK_ROWS)
            a = pred_ref[pl.ds(r0, _CHUNK_ROWS), :].astype(jnp.float32)
            b = label_ref[pl.ds(r0, _CHUNK_ROWS), :].astype(jnp.float32)
            d = jnp.abs(a - b)
            if masked:
                flat = base + j * (_CHUNK_ROWS * LANES) + local
                d = jnp.where(flat < total_elems, d, 0.0)
            return acc + jnp.sum(d.reshape(-1, SUBLANES, LANES), axis=0)

        return lax.fori_loop(0, n_chunks, body,
                             jnp.zeros((SUBLANES, LANES), jnp.float32))

    # Fast path: the tile lies entirely inside the logical element range.
    @pl.when(base + tile_elems <= total_elems)
    def _():
        out_ref[...] += partial_sum(masked=False)[None]

    # Tail path: the tile covers the ragged end (or lies fully past it, e.g.
    # the replayed clamped tile on an odd split) -- mask by flat element index
    # so Pallas' unspecified partial-block padding / replayed data adds 0.
    @pl.when(base + tile_elems > total_elems)
    def _():
        out_ref[...] += partial_sum(masked=True)[None]


def _as_lane_slab(x: jax.Array) -> jax.Array:
    """Flatten to a lane-dense (rows, 128) slab; pad only if size % 128 != 0."""
    flat = x.reshape(-1)
    rem = flat.shape[0] % LANES
    if rem:
        # TODO(synk): for very large inputs whose size is not a multiple of 128
        # this pad is still one HBM copy; a 1-D-block kernel variant would avoid it.
        flat = jnp.pad(flat, (0, LANES - rem))
    return flat.reshape(-1, LANES)


@functools.lru_cache(maxsize=None)
def _device_tuning():
    """Returns (streaming block bytes per input, number of TensorCore partials)."""
    try:
        kind = jax.devices()[0].device_kind.lower()
    except Exception:
        kind = ""
    # v5e's scoped-VMEM default is only 16 MiB -> 2 MiB blocks keep
    # 2 inputs x 2 pipeline buffers at 8 MiB.  v6e/v7x take 4 MiB blocks
    # (16 MiB double-buffered, inside the 32 MiB scoped default).
    block_bytes = (2 << 20) if "v5" in kind else (4 << 20)
    # v7x has 2 TensorCores per chip: split the DMA stream across them.
    num_partials = 2 if ("v7" in kind or "7x" in kind) else 1
    return block_bytes, num_partials


def molecules_criterion(pred: jax.Array, label: jax.Array) -> jax.Array:
    """Mean absolute error (nn.L1Loss with default 'mean' reduction)."""
    assert pred.shape == label.shape, "pred/label must have identical shapes"
    total = pred.size
    itemsize = jnp.dtype(pred.dtype).itemsize

    cost = pl.CostEstimate(
        flops=3 * total,                               # sub + abs + accumulate
        transcendentals=0,
        bytes_accessed=2 * total * itemsize + 4,
    )

    pred2d = _as_lane_slab(pred)
    label2d = _as_lane_slab(label)
    rows = pred2d.shape[0]

    if total * itemsize <= _SINGLE_BLOCK_MAX_BYTES:
        # --- gridless path: one block, no accumulator/finalize machinery ---
        out = pl.pallas_call(
            functools.partial(_l1_single_block_kernel, total),
            out_shape=jax.ShapeDtypeStruct((1,), jnp.float32),
            out_specs=pl.BlockSpec(memory_space=pltpu.SMEM),
            compiler_params=pltpu.CompilerParams(
                # let XLA fuse the wrapper reshape/pad into this call so the
                # tiny-input case pays for a single dispatch
                allow_input_fusion=[True, True],
            ),
            cost_estimate=cost,
        )(pred2d, label2d)
        return out[0]

    # --- streaming path for large inputs ---
    block_bytes, num_partials = _device_tuning()
    tile_rows = max(
        _CHUNK_ROWS,
        (block_bytes // (LANES * itemsize)) // _CHUNK_ROWS * _CHUNK_ROWS,
    )
    num_tiles = pl.cdiv(rows, tile_rows)
    num_partials = min(num_partials, num_tiles)
    tiles_per_core = pl.cdiv(num_tiles, num_partials)

    def in_map(c, t):
        # Clamp so an odd tile count on the 2-core split never produces an
        # out-of-range block index (the replayed tile is masked to 0 in-kernel).
        return (jnp.minimum(c * tiles_per_core + t, num_tiles - 1), 0)

    partials = pl.pallas_call(
        functools.partial(_l1_tiled_kernel, total, tile_rows, tiles_per_core),
        out_shape=jax.ShapeDtypeStruct((num_partials, SUBLANES, LANES), jnp.float32),
        grid=(num_partials, tiles_per_core),
        in_specs=[
            pl.BlockSpec((tile_rows, LANES), in_map),
            pl.BlockSpec((tile_rows, LANES), in_map),
        ],
        out_specs=pl.BlockSpec((1, SUBLANES, LANES), lambda c, t: (c, 0, 0)),
        compiler_params=pltpu.CompilerParams(
            dimension_semantics=("parallel", "arbitrary"),
        ),
        cost_estimate=cost,
    )(pred2d, label2d)
    # One tiny XLA reduce over (num_partials, 8, 128) finishes the mean.
    return jnp.sum(partials) / jnp.float32(total)


if __name__ == "__main__":
    key = jax.random.PRNGKey(0)
    k1, k2, k3, k4 = jax.random.split(key, 4)

    # Primary case: small NCHW-like regression tensors implied by the module.
    shape = (2, 4, 16, 16)
    pred = jax.random.normal(k1, shape, dtype=jnp.float32)
    label = jax.random.normal(k2, shape, dtype=jnp.float32)
    loss = jax.block_until_ready(molecules_criterion(pred, label))
    ref = jnp.mean(jnp.abs(pred - label))
    assert jnp.allclose(loss, ref, atol=1e-5, rtol=1e-5), (loss, ref)

    # Ragged size (not a multiple of 128): exercises the small-pad path.
    shape_r = (2, 3, 5, 7)
    p_r = jax.random.normal(k3, shape_r, dtype=jnp.float32)
    l_r = jax.random.normal(k4, shape_r, dtype=jnp.float32)
    loss_r = jax.block_until_ready(molecules_criterion(p_r, l_r))
    ref_r = jnp.mean(jnp.abs(p_r - l_r))
    assert jnp.allclose(loss_r, ref_r, atol=1e-5, rtol=1e-5), (loss_r, ref_r)

    # bf16 inputs: verifies the f32-before-subtract parity fix.
    p_h = jax.random.normal(k1, shape, dtype=jnp.bfloat16)
    l_h = jax.random.normal(k2, shape, dtype=jnp.bfloat16)
    loss_h = jax.block_until_ready(molecules_criterion(p_h, l_h))
    ref_h = jnp.mean(jnp.abs(p_h.astype(jnp.float32) - l_h.astype(jnp.float32)))
    assert jnp.allclose(loss_h, ref_h, atol=1e-5, rtol=1e-5), (loss_h, ref_h)

    # Larger input (> 4 MiB/operand): exercises the streaming path, the
    # in-kernel ragged-tile masking and (on v7x) the 2-TensorCore split.
    shape_big = (16, 8, 128, 160)  # 2,621,440 elems = 10 MiB f32
    p_b = jax.random.normal(k1, shape_big, dtype=jnp.float32)
    l_b = jax.random.normal(k2, shape_big, dtype=jnp.float32)
    loss_b = jax.block_until_ready(molecules_criterion(p_b, l_b))
    ref_b = jnp.mean(jnp.abs(p_b - l_b))
    assert jnp.allclose(loss_b, ref_b, atol=1e-5, rtol=1e-5), (loss_b, ref_b)

    print("KERNEL_OK")
</pallas_src>

<mosaic_0001>
module attributes {stable_mosaic.version = 11 : i64} {
  func.func @_l1_single_block_kernel(%arg0: memref<16x128xf32, #tpu.memory_space<vmem>>, %arg1: memref<16x128xf32, #tpu.memory_space<vmem>>, %arg2: memref<1xf32, #tpu.memory_space<smem>>) attributes {dimension_semantics = [], scalar_prefetch = 0 : i64, scratch_operands = 0 : i64, tpu.core_type = #tpu.core_type<tc>} {
    %c0 = arith.constant 0 : index
    %c0_0 = arith.constant 0 : index
    %0 = vector.load %arg0[%c0, %c0_0] : memref<16x128xf32, #tpu.memory_space<vmem>>, vector<16x128xf32>
    %c0_1 = arith.constant 0 : index
    %c0_2 = arith.constant 0 : index
    %1 = vector.load %arg1[%c0_1, %c0_2] : memref<16x128xf32, #tpu.memory_space<vmem>>, vector<16x128xf32>
    %2 = arith.subf %0, %1 : vector<16x128xf32>
    %3 = math.absf %2 : vector<16x128xf32>
    %4 = vector.shape_cast %3 : vector<16x128xf32> to vector<1x16x128xf32>
    %cst = arith.constant dense<0.000000e+00> : vector<1xf32>
    %5 = vector.multi_reduction <add>, %4, %cst [1, 2] : vector<1x16x128xf32> to vector<1xf32>
    %6 = vector.shape_cast %5 : vector<1xf32> to vector<1x1x1xf32>
    %7 = vector.extract %6[0, 0, 0] : f32 from vector<1x1x1xf32>
    %cst_3 = arith.constant 0.000000e+00 : f32
    %8 = arith.addf %cst_3, %7 : f32
    %cst_4 = arith.constant 2.048000e+03 : f32
    %9 = arith.divf %8, %cst_4 : f32
    %c0_5 = arith.constant 0 : index
    %10 = memref.load %arg2[%c0_5] : memref<1xf32, #tpu.memory_space<smem>>
    memref.store %9, %arg2[%c0_5] : memref<1xf32, #tpu.memory_space<smem>>
    return
  }
}

</mosaic_0001>

<bundles_post_ra>
// kernel: tpu_custom_call.1
= control target key start
LH: loop header
LB: loop body
LE: loop exit
PB: predicated region body
PF: predicated region fallthrough
CT: control target
= control target key end

     0   :  { %7 = vsyncpa [#allocation3], 0  ;;  %s199_s0 = inlined_call_operand.hbm [shape: f32[16,128], index: 0, kind: input, shape index: {}]   ;;  %s200_s1 = inlined_call_operand.hbm [shape: f32[16,128], index: 1, kind: input, shape index: {}]   ;;  %s201_s2 = inlined_call_operand.hbm [shape: f32[1], index: 2, kind: output, shape index: {}]  }
   0x1   :  { %8 = vsyncpa [#allocation6], 0 }
   0x2   :  { %9 = vsyncpa [#allocation4], 0  ;;  %s14_s11 = sshll.u32 %s199_s0, 4  ;;  %s169_s12 = smov [#allocation2]   ;;  %s15_s11 = int_to_ptr.hbm [resolvable:$true] %s14_s11 }
   0x3   :  { %s16_s13 = sshll.u32 %s169_s12, 4  ;;  %s27_s16 = sshll.u32 %s200_s1, 4  ;;  %s17_s13 = int_to_ptr.vmem [resolvable:$true] %s16_s13  ;;  %s28_s16 = int_to_ptr.hbm [resolvable:$true] %s27_s16 }
   0x4   :  { %s170_s17 = smov 128   ;;  %s171_s18 = smov 8  }
   0x5   :  { %22 = dma.hbm_to_vmem [thread:$0]  %s15_s11, 256, %s17_s13, [#allocation3], %s170_s17, %s170_s17, %s171_s18  }
   0x6   :  { %s172_s19 = smov [#allocation5]  }
   0x7   :  { %s29_s20 = sshll.u32 %s172_s19, 4  ;;  %s30_s20 = int_to_ptr.vmem [resolvable:$true] %s29_s20 }
   0x8   :  { %35 = dma.hbm_to_vmem [thread:$0]  %s28_s16, 256, %s30_s20, [#allocation6], %s170_s17, %s170_s17, %s171_s18  }
   0x9   :  { %163 = dma.done.wait [#allocation3], 256  }
   0xa   :  { %164 = vsyncadd [#allocation3], 4294967040 }
   0xb   :  { %165 = dma.done.wait [#allocation6], 256  }
   0xc   :  { %166 = vsyncadd [#allocation6], 4294967040  ;;  %v44_v0 = vld [vmem:[#allocation2] sm:$0xff]  ;;  %v45_v1 = vld [vmem:[#allocation2 + $0x8] sm:$0xff]  ;;  %v173_v9 = vmov 2048.0   ;;  %s79_s21 = sshll.u32 %s201_s2, 4  ;;  %s80_s21 = int_to_ptr.hbm [resolvable:$true] %s79_s21 }
   0xd   :  { %v46_v2 = vld [vmem:[#allocation5] sm:$0xff]  ;;  %v47_v3 = vld [vmem:[#allocation5 + $0x8] sm:$0xff]  ;;  %101 = vrcp.f32 %v173_v9  ;;  %s174_s25 = smov [#allocation7]  }
   0xe   :  { %v48_v4 = vsub.f32 %v44_v0, %v46_v2  ;;  %v49_v5 = vsub.f32 %v45_v1, %v47_v3 }
  0x10   :  { %v50_v6 = vand.u32 2147483647, %v48_v4  ;;  %v51_v7 = vand.u32 2147483647, %v49_v5 }
  0x12   :  { %v52_v8 = vadd.f32 %v51_v7, %v50_v6 }
  0x13   :  { %v102_v10 = vpop.eup %101 }
  0x14   :  { %53 = vadd.xlane.f32.xlu0 %v52_v8  ;;  %v64_v11 = vmul.f32 2048.0, %v102_v10  ;;  %vm68_vm0 = vweird.f32 %v102_v10 }
  0x16   :  { %v65_v12 = vsub.f32 1.0, %v64_v11 }
  0x18   :  { %v66_v16 = vmul.f32 %v102_v10, %v65_v12 }
  0x1a   :  { %v67_v19 = vadd.f32 %v102_v10, %v66_v16 }
  0x1c   :  { %v69_v22 = vsel %vm68_vm0, %v102_v10, %v67_v19 }
  0x87   :  { %v54_v13 = vpop.xlane.xlu0 %53 }
  0x88   :  { %v55_v14 = vrot.slane %v54_v13, 4 }
  0x8a   :  { %v56_v15 = vadd.f32 %v55_v14, %v54_v13 }
  0x8c   :  { %v57_v17 = vrot.slane %v56_v15, 2 }
  0x8e   :  { %v58_v18 = vadd.f32 %v57_v17, %v56_v15 }
  0x90   :  { %v59_v20 = vrot.slane %v58_v18, 1 }
  0x92   :  { %v60_v21 = vadd.f32 %v59_v20, %v58_v18 }
  0x94   :  { %91 = vpush %v60_v21 }
  0x95   :  { %93 = vpush %v69_v22 }
  0xc5   :  { %s92_s22 = spop %91 }
  0xc6   :  { %s94_s23 = spop %93 }
  0xc7   :  { %s71_s24 = smul.f32 %s94_s23, %s92_s22 }
  0xc9   :  { %73 = sst [smem:[#allocation7]] %s71_s24 }
  0xca   :  { %82 = dma.smem_to_hbm %s174_s25, 16, %s80_s21, [#allocation4]  }
  0xcb   :  { %167 = dma.done.wait [#allocation4], 16  }
  0xcc   :  { %168 = vsyncadd [#allocation4], 4294967280 }
  0xcd   :  { %87 = sfence }
  0xce   :  { %88 = vsyncpa [#allocation3], 1 }
  0xcf   :  { %89 = vsyncpa [#allocation6], 1 }
  0xd0   :  { %90 = vsyncpa [#allocation4], 1 }

</bundles_post_ra>
